<compile_context>
chip_gen: v7x
topology: tpu7x:2x2x1
jax: 0.10.0
libtpu: 0.0.40
codegen_flags: <defaults>
</compile_context>

<pallas_src>
import functools

import jax
import jax.numpy as jnp
from jax import lax
from jax.experimental import pallas as pl
from jax.experimental.pallas import tpu as pltpu

EPS = 1e-5  # GroupNorm default eps


# ----------------------------------------------------------------------------
# Kernel
# ----------------------------------------------------------------------------
def block_kernel(x_ref, w_ref, p_ref, o_ref, *, cout: int, cp: int):
    x = x_ref[0]                      # (Cin, L), io dtype (f32 or bf16)
    L = x.shape[1]

    # One MXU matmul: 3 conv taps stacked along M -> (3*Cp, L), f32 accumulate.
    z = jnp.dot(w_ref[...], x, preferred_element_type=jnp.float32)

    # Tap row-blocks (Cp is a sublane multiple -> slices stay tile-aligned).
    z0 = z[0 * cp:1 * cp]             # weights w[:, :, 0]  (needs x[l-1])
    z1 = z[1 * cp:2 * cp]             # weights w[:, :, 1]  (x[l])
    z2 = z[2 * cp:3 * cp]             # weights w[:, :, 2]  (needs x[l+1])

    # Roll-on-output: shift the f32 tap outputs instead of the inputs.
    col = lax.broadcasted_iota(jnp.int32, (1, L), 1)
    y_l = jnp.where(col == 0, 0.0, pltpu.roll(z0, shift=1, axis=1))       # z0[l-1]
    y_r = jnp.where(col == L - 1, 0.0, pltpu.roll(z2, shift=L - 1, axis=1))  # z2[l+1]

    # Packed per-channel params (f32): [0]=conv bias, [1]=A, [2]=Bv, each (Cp,1).
    bias = p_ref[0, 0]
    a_vec = p_ref[0, 1]
    bv_vec = p_ref[0, 2]

    # Conv output (pad rows are exactly zero: zero weights + zero bias).
    y = y_l + z1 + y_r + bias                                  # (Cp, L) f32

    # GroupNorm(num_groups=1): two-pass stats over the true (cout, L) slab.
    n = cout * L
    s1 = jnp.sum(jnp.sum(y, axis=-1, keepdims=True))           # lane reduce first
    mean = s1 / n
    d = y - mean
    ssq = jnp.sum(jnp.sum(d * d, axis=-1, keepdims=True))
    # Zero pad rows contribute mean^2 each to ssq; remove them exactly.
    ssq = ssq - (cp - cout) * L * (mean * mean)
    var = jnp.maximum(ssq / n, 0.0)
    y = d * lax.rsqrt(var + EPS)

    # Folded affine + optional scale_shift:  gamma,beta,(scale+1),shift -> A,Bv
    y = y * a_vec + bv_vec

    # SiLU; store only the true output channels.
    out = y * jax.nn.sigmoid(y)
    o_ref[0] = out[:cout].astype(o_ref.dtype)


# ----------------------------------------------------------------------------
# Wrapper
# ----------------------------------------------------------------------------
def _vmem_cap_bytes():
    try:
        info = pltpu.get_tpu_info()
        cap = getattr(info, "vmem_capacity_bytes", None)
        if cap:
            return int(cap)
    except Exception:
        pass
    return 64 << 20  # conservative (v7x per-TensorCore)


def block_forward(x, w, b, gamma, beta, scale_shift=None):
    """x: (B, Cin, L); w: (Cout, Cin, 3); b/gamma/beta: (Cout,)
       scale_shift: None or (2, B, Cout, 1).  Output dtype follows x.dtype."""
    B, Cin, L = x.shape
    Cout = w.shape[0]
    io_dtype = x.dtype
    io_bytes = jnp.dtype(io_dtype).itemsize

    # Pad output channels (weights + params only) to the sublane pack so the
    # tap row-block slices / rolls / stores stay sublane-tile aligned.
    sub = 8 if io_bytes == 4 else 16
    Cp = ((Cout + sub - 1) // sub) * sub

    # Taps stacked along M: rows [t*Cp, (t+1)*Cp) hold w[:, :, t] (zero-padded).
    w_t = jnp.transpose(w, (2, 0, 1))                     # (3, Cout, Cin)
    if Cp != Cout:
        w_t = jnp.pad(w_t, ((0, 0), (0, Cp - Cout), (0, 0)))
    w_stacked = w_t.reshape(3 * Cp, Cin).astype(io_dtype)

    # Fold gamma/beta and optional scale_shift; pack with the conv bias.
    b32 = b.astype(jnp.float32)
    g32 = gamma.astype(jnp.float32)
    bt32 = beta.astype(jnp.float32)
    if scale_shift is None:
        bias_vec = b32[None, :]                           # (1, Cout) - batch invariant
        a_vec = g32[None, :]
        bv_vec = bt32[None, :]
        p_map = lambda bi: (0, 0, 0, 0)                   # resident across grid
    else:
        scale = scale_shift[0].reshape(B, Cout).astype(jnp.float32)
        shift = scale_shift[1].reshape(B, Cout).astype(jnp.float32)
        bias_vec = jnp.broadcast_to(b32[None, :], (B, Cout))
        a_vec = g32[None, :] * (scale + 1.0)
        bv_vec = bt32[None, :] * (scale + 1.0) + shift
        p_map = lambda bi: (bi, 0, 0, 0)
    params = jnp.stack([bias_vec, a_vec, bv_vec], axis=1)  # (Bp, 3, Cout)
    if Cp != Cout:
        params = jnp.pad(params, ((0, 0), (0, 0), (0, Cp - Cout)))
    params = params[..., None]                             # (Bp, 3, Cp, 1)
    Bp = params.shape[0]

    # VMEM budget (double-buffered I/O blocks + weights/params + f32 temps).
    est_bytes = (
        2 * Cin * L * io_bytes              # pipelined x blocks
        + 2 * Cout * L * io_bytes           # pipelined out blocks
        + 2 * 3 * Cp * Cin * io_bytes       # stacked weights
        + 2 * 3 * Cp * 128 * 4              # packed params (lane padded)
        + 3 * Cp * L * 4                    # matmul result z
        + 4 * Cp * L * 4                    # rolled taps / y / d f32 temps
    )
    cap = _vmem_cap_bytes()
    if est_bytes + (8 << 20) > cap:
        # TODO(synk): L-tiled two-pass GroupNorm path for slabs exceeding VMEM.
        raise NotImplementedError(
            "Block slab does not fit per-core VMEM; needs the L-tiled path.")
    vmem_limit = int(min(cap - (4 << 20), max(32 << 20, est_bytes + (4 << 20))))

    kernel = functools.partial(block_kernel, cout=Cout, cp=Cp)
    return pl.pallas_call(
        kernel,
        out_shape=jax.ShapeDtypeStruct((B, Cout, L), io_dtype),
        grid=(B,),
        in_specs=[
            pl.BlockSpec((1, Cin, L), lambda bi: (bi, 0, 0)),          # x
            pl.BlockSpec((3 * Cp, Cin), lambda bi: (0, 0)),            # stacked taps
            pl.BlockSpec((1, 3, Cp, 1), p_map),                        # bias / A / Bv
        ],
        out_specs=pl.BlockSpec((1, Cout, L), lambda bi: (bi, 0, 0)),
        compiler_params=pltpu.CompilerParams(
            dimension_semantics=("parallel",),
            vmem_limit_bytes=vmem_limit),
    )(x, w_stacked, params)


# ----------------------------------------------------------------------------
# Pure-JAX reference (mirrors the PyTorch forward exactly)
# ----------------------------------------------------------------------------
def block_reference(x, w, b, gamma, beta, scale_shift=None):
    x = x.astype(jnp.float32)
    w = w.astype(jnp.float32)
    y = lax.conv_general_dilated(
        x, w, window_strides=(1,), padding="SAME",
        dimension_numbers=("NCH", "OIH", "NCH")) + b[None, :, None]
    mean = y.mean(axis=(1, 2), keepdims=True)
    var = ((y - mean) ** 2).mean(axis=(1, 2), keepdims=True)
    y = (y - mean) / jnp.sqrt(var + EPS)
    y = y * gamma[None, :, None] + beta[None, :, None]
    if scale_shift is not None:
        scale, shift = scale_shift[0], scale_shift[1]
        y = y * (scale + 1.0) + shift
    return y * jax.nn.sigmoid(y)


if __name__ == "__main__":
    B, DIM_IN, DIM_OUT, L = 2, 8, 8, 128

    key = jax.random.PRNGKey(0)
    k_x, k_w, k_b, k_g, k_bt, k_ss = jax.random.split(key, 6)

    x = jax.random.normal(k_x, (B, DIM_IN, L), jnp.float32)
    w = jax.random.normal(k_w, (DIM_OUT, DIM_IN, 3), jnp.float32) * 0.2
    b = jax.random.normal(k_b, (DIM_OUT,), jnp.float32) * 0.1
    gamma = 1.0 + 0.1 * jax.random.normal(k_g, (DIM_OUT,), jnp.float32)
    beta = 0.1 * jax.random.normal(k_bt, (DIM_OUT,), jnp.float32)
    scale_shift = jax.random.normal(k_ss, (2, B, DIM_OUT, 1), jnp.float32) * 0.5

    # f32 path with scale_shift
    out = jax.block_until_ready(
        block_forward(x, w, b, gamma, beta, scale_shift))
    ref = jax.block_until_ready(
        block_reference(x, w, b, gamma, beta, scale_shift))
    assert out.shape == (B, DIM_OUT, L), out.shape
    assert jnp.allclose(out, ref, atol=1e-4, rtol=1e-4), (
        float(jnp.max(jnp.abs(out - ref))))

    # f32 path without scale_shift (batch-invariant resident params)
    out_none = jax.block_until_ready(block_forward(x, w, b, gamma, beta, None))
    ref_none = block_reference(x, w, b, gamma, beta, None)
    assert jnp.allclose(out_none, ref_none, atol=1e-4, rtol=1e-4), (
        float(jnp.max(jnp.abs(out_none - ref_none))))

    # bf16 I/O path (exercises the padded-Cout branch: Cp=16 > Cout=8):
    # bf16 HBM traffic + bf16 MXU operands, f32 stats/normalization inside.
    out_bf16 = jax.block_until_ready(
        block_forward(x.astype(jnp.bfloat16), w, b, gamma, beta, scale_shift))
    assert out_bf16.dtype == jnp.bfloat16
    assert out_bf16.shape == (B, DIM_OUT, L)
    diff_bf16 = float(jnp.max(jnp.abs(out_bf16.astype(jnp.float32) - ref)))
    assert diff_bf16 < 0.25, diff_bf16

    print("KERNEL_OK")
</pallas_src>

<mosaic_0001>
module attributes {stable_mosaic.version = 11 : i64} {
  func.func @block_kernel(%arg0: i32, %arg1: memref<1x8x128xf32, #tpu.memory_space<vmem>>, %arg2: memref<24x8xf32, #tpu.memory_space<vmem>>, %arg3: memref<1x3x8x1xf32, #tpu.memory_space<vmem>>, %arg4: memref<1x8x128xf32, #tpu.memory_space<vmem>>) attributes {dimension_semantics = [#tpu.dimension_semantics<parallel>], iteration_bounds = array<i64: 2>, scalar_prefetch = 0 : i64, scratch_operands = 0 : i64, tpu.core_type = #tpu.core_type<tc>, window_params = [{transform_indices = @transform_0, window_bounds = array<i64: 1, 8, 128>}, {pipeline_mode = #tpu.pipeline_mode<synchronous>, transform_indices = @transform_1, window_bounds = array<i64: 24, 8>}, {transform_indices = @transform_2, window_bounds = array<i64: 1, 3, 8, 1>}, {transform_indices = @transform_3, window_bounds = array<i64: 1, 8, 128>}]} {
    %c0 = arith.constant 0 : index
    %c0_0 = arith.constant 0 : index
    %c0_1 = arith.constant 0 : index
    %0 = vector.load %arg1[%c0, %c0_0, %c0_1] : memref<1x8x128xf32, #tpu.memory_space<vmem>>, vector<1x8x128xf32>
    %1 = vector.shape_cast %0 : vector<1x8x128xf32> to vector<8x128xf32>
    %c0_2 = arith.constant 0 : index
    %c0_3 = arith.constant 0 : index
    %2 = vector.load %arg2[%c0_2, %c0_3] : memref<24x8xf32, #tpu.memory_space<vmem>>, vector<24x8xf32>
    %cst = arith.constant dense<0.000000e+00> : vector<24x128xf32>
    %3 = tpu.matmul %2, %1, %cst {dimension_numbers = #tpu.dot_dimension_numbers<[1], [0], [0], [1], [0, 0, 1, 1], [], []>} : vector<24x8xf32>, vector<8x128xf32>, vector<24x128xf32> -> vector<24x128xf32>
    %4 = vector.extract_strided_slice %3 {offsets = [0, 0], sizes = [8, 128], strides = [1, 1]} : vector<24x128xf32> to vector<8x128xf32>
    %5 = vector.extract_strided_slice %3 {offsets = [8, 0], sizes = [8, 128], strides = [1, 1]} : vector<24x128xf32> to vector<8x128xf32>
    %6 = vector.extract_strided_slice %3 {offsets = [16, 0], sizes = [8, 128], strides = [1, 1]} : vector<24x128xf32> to vector<8x128xf32>
    %7 = tpu.iota {dimensions = array<i32: 1>} : vector<1x128xi32>
    %c0_i32 = arith.constant 0 : i32
    %8 = vector.broadcast %c0_i32 : i32 to vector<1x128xi32>
    %9 = arith.cmpi eq, %7, %8 : vector<1x128xi32>
    %c1_i32 = arith.constant 1 : i32
    %10 = tpu.dynamic_rotate %4 by %c1_i32 dim 1 : vector<8x128xf32>, i32 -> vector<8x128xf32>
    %cst_4 = arith.constant 0.000000e+00 : f32
    %11 = vector.shape_cast %9 : vector<1x128xi1> to vector<1x128xi1>
    %12 = vector.broadcast %11 : vector<1x128xi1> to vector<8x128xi1>
    %13 = vector.broadcast %cst_4 : f32 to vector<8x128xf32>
    %14 = arith.select %12, %13, %10 : vector<8x128xi1>, vector<8x128xf32>
    %c127_i32 = arith.constant 127 : i32
    %15 = vector.broadcast %c127_i32 : i32 to vector<1x128xi32>
    %16 = arith.cmpi eq, %7, %15 : vector<1x128xi32>
    %c127_i32_5 = arith.constant 127 : i32
    %17 = tpu.dynamic_rotate %6 by %c127_i32_5 dim 1 : vector<8x128xf32>, i32 -> vector<8x128xf32>
    %cst_6 = arith.constant 0.000000e+00 : f32
    %18 = vector.shape_cast %16 : vector<1x128xi1> to vector<1x128xi1>
    %19 = vector.broadcast %18 : vector<1x128xi1> to vector<8x128xi1>
    %20 = vector.broadcast %cst_6 : f32 to vector<8x128xf32>
    %21 = arith.select %19, %20, %17 : vector<8x128xi1>, vector<8x128xf32>
    %c0_7 = arith.constant 0 : index
    %c0_8 = arith.constant 0 : index
    %c0_9 = arith.constant 0 : index
    %c0_10 = arith.constant 0 : index
    %22 = vector.load %arg3[%c0_7, %c0_8, %c0_9, %c0_10] : memref<1x3x8x1xf32, #tpu.memory_space<vmem>>, vector<1x1x8x1xf32>
    %23 = vector.shape_cast %22 : vector<1x1x8x1xf32> to vector<8x1xf32>
    %c0_11 = arith.constant 0 : index
    %c1 = arith.constant 1 : index
    %c0_12 = arith.constant 0 : index
    %c0_13 = arith.constant 0 : index
    %24 = vector.load %arg3[%c0_11, %c1, %c0_12, %c0_13] : memref<1x3x8x1xf32, #tpu.memory_space<vmem>>, vector<1x1x8x1xf32>
    %25 = vector.shape_cast %24 : vector<1x1x8x1xf32> to vector<8x1xf32>
    %c0_14 = arith.constant 0 : index
    %c2 = arith.constant 2 : index
    %c0_15 = arith.constant 0 : index
    %c0_16 = arith.constant 0 : index
    %26 = vector.load %arg3[%c0_14, %c2, %c0_15, %c0_16] : memref<1x3x8x1xf32, #tpu.memory_space<vmem>>, vector<1x1x8x1xf32>
    %27 = vector.shape_cast %26 : vector<1x1x8x1xf32> to vector<8x1xf32>
    %28 = arith.addf %14, %5 : vector<8x128xf32>
    %29 = arith.addf %28, %21 : vector<8x128xf32>
    %30 = vector.broadcast %23 : vector<8x1xf32> to vector<8x128xf32>
    %31 = arith.addf %29, %30 : vector<8x128xf32>
    %cst_17 = arith.constant dense<0.000000e+00> : vector<8xf32>
    %32 = vector.multi_reduction <add>, %31, %cst_17 [1] : vector<8x128xf32> to vector<8xf32>
    %33 = vector.shape_cast %32 : vector<8xf32> to vector<8x1xf32>
    %34 = vector.shape_cast %33 : vector<8x1xf32> to vector<1x8x1xf32>
    %cst_18 = arith.constant dense<0.000000e+00> : vector<1xf32>
    %35 = vector.multi_reduction <add>, %34, %cst_18 [1, 2] : vector<1x8x1xf32> to vector<1xf32>
    %36 = vector.shape_cast %35 : vector<1xf32> to vector<1x1x1xf32>
    %37 = vector.extract %36[0, 0, 0] : f32 from vector<1x1x1xf32>
    %cst_19 = arith.constant 1.024000e+03 : f32
    %38 = arith.divf %37, %cst_19 : f32
    %39 = vector.broadcast %38 : f32 to vector<8x128xf32>
    %40 = arith.subf %31, %39 : vector<8x128xf32>
    %41 = arith.mulf %40, %40 : vector<8x128xf32>
    %cst_20 = arith.constant dense<0.000000e+00> : vector<8xf32>
    %42 = vector.multi_reduction <add>, %41, %cst_20 [1] : vector<8x128xf32> to vector<8xf32>
    %43 = vector.shape_cast %42 : vector<8xf32> to vector<8x1xf32>
    %44 = vector.shape_cast %43 : vector<8x1xf32> to vector<1x8x1xf32>
    %cst_21 = arith.constant dense<0.000000e+00> : vector<1xf32>
    %45 = vector.multi_reduction <add>, %44, %cst_21 [1, 2] : vector<1x8x1xf32> to vector<1xf32>
    %46 = vector.shape_cast %45 : vector<1xf32> to vector<1x1x1xf32>
    %47 = vector.extract %46[0, 0, 0] : f32 from vector<1x1x1xf32>
    %48 = arith.mulf %38, %38 : f32
    %cst_22 = arith.constant 0.000000e+00 : f32
    %49 = arith.mulf %cst_22, %48 : f32
    %50 = arith.subf %47, %49 : f32
    %cst_23 = arith.constant 1.024000e+03 : f32
    %51 = arith.divf %50, %cst_23 : f32
    %cst_24 = arith.constant 0.000000e+00 : f32
    %52 = arith.maximumf %51, %cst_24 : f32
    %cst_25 = arith.constant 9.99999974E-6 : f32
    %53 = arith.addf %52, %cst_25 : f32
    %54 = math.rsqrt %53 : f32
    %55 = vector.broadcast %54 : f32 to vector<8x128xf32>
    %56 = arith.mulf %40, %55 : vector<8x128xf32>
    %57 = vector.broadcast %25 : vector<8x1xf32> to vector<8x128xf32>
    %58 = arith.mulf %56, %57 : vector<8x128xf32>
    %59 = vector.broadcast %27 : vector<8x1xf32> to vector<8x128xf32>
    %60 = arith.addf %58, %59 : vector<8x128xf32>
    %61 = arith.negf %60 : vector<8x128xf32>
    %62 = math.exp %61 : vector<8x128xf32>
    %cst_26 = arith.constant 1.000000e+00 : f32
    %63 = vector.broadcast %cst_26 : f32 to vector<8x128xf32>
    %64 = arith.addf %63, %62 : vector<8x128xf32>
    %65 = arith.divf %63, %64 : vector<8x128xf32>
    %66 = arith.mulf %60, %65 : vector<8x128xf32>
    %c0_27 = arith.constant 0 : index
    %c0_28 = arith.constant 0 : index
    %c0_29 = arith.constant 0 : index
    %67 = vector.load %arg4[%c0_27, %c0_28, %c0_29] : memref<1x8x128xf32, #tpu.memory_space<vmem>>, vector<1x8x128xf32>
    %68 = vector.shape_cast %67 : vector<1x8x128xf32> to vector<8x128xf32>
    %69 = vector.shape_cast %66 : vector<8x128xf32> to vector<1x8x128xf32>
    tpu.vector_store %arg4[%c0_27, %c0_28, %c0_29], %69 {strides = array<i32>} : memref<1x8x128xf32, #tpu.memory_space<vmem>>, vector<1x8x128xf32>,
    return
  }
  func.func @transform_0(%arg0: i32) -> (i32, i32, i32) {
    %c0_i32 = arith.constant 0 : i32
    %c0_i32_0 = arith.constant 0 : i32
    %c0_i32_1 = arith.constant 0 : i32
    return %arg0, %c0_i32, %c0_i32_0 : i32, i32, i32
  }
  func.func @transform_1(%arg0: i32) -> (i32, i32) {
    %c0_i32 = arith.constant 0 : i32
    %c0_i32_0 = arith.constant 0 : i32
    %c0_i32_1 = arith.constant 0 : i32
    return %c0_i32, %c0_i32_0 : i32, i32
  }
  func.func @transform_2(%arg0: i32) -> (i32, i32, i32, i32) {
    %c0_i32 = arith.constant 0 : i32
    %c0_i32_0 = arith.constant 0 : i32
    %c0_i32_1 = arith.constant 0 : i32
    %c0_i32_2 = arith.constant 0 : i32
    return %arg0, %c0_i32, %c0_i32_0, %c0_i32_1 : i32, i32, i32, i32
  }
  func.func @transform_3(%arg0: i32) -> (i32, i32, i32) {
    %c0_i32 = arith.constant 0 : i32
    %c0_i32_0 = arith.constant 0 : i32
    %c0_i32_1 = arith.constant 0 : i32
    return %arg0, %c0_i32, %c0_i32_0 : i32, i32, i32
  }
}

</mosaic_0001>

<bundles_post_ra>
// kernel: tpu_custom_call.1
= control target key start
LH: loop header
LB: loop body
LE: loop exit
PB: predicated region body
PF: predicated region fallthrough
CT: control target
= control target key end

     0   :  { %8 = vsyncpa [#allocation3], 0  ;;  %s763_s0 = inlined_call_operand.vmem [shape: f32[2,8,128], index: 0, kind: input, shape index: {}]   ;;  %s764_s1 = inlined_call_operand.vmem [shape: f32[24,8], index: 1, kind: input, shape index: {}]   ;;  %s765_s2 = inlined_call_operand.vmem [shape: f32[2,3,8,1], index: 2, kind: input, shape index: {}]   ;;  %s766_s3 = inlined_call_operand.hbm [shape: f32[2,8,128], index: 3, kind: output, shape index: {}]  }
   0x1   :  { %10 = vsyncpa [#allocation3 + $0x1], 0  ;;  %s641_s12 = smov 0   ;;  %s643_s13 = smov 0  }
   0x2   :  { %s645_s14 = smov 0   ;;  %s647_s15 = smov 0  }
   0x3 LB: > { %s662_s16 = sadd.s32 4294967295, %s612_s15   ;;  %s456_s17 = sadd.s32 4294967294, %s612_s15   ;;  %s612_s15 = sphi %s647_s15, %s772_s15   ;;  %s608_s14 = sphi %s645_s14, %s771_s14   ;;  %s604_s13 = sphi %s643_s13, %s770_s13   ;;  %s600_s12 = sphi %s641_s12, %s769_s12  }
   0x4   : > { %s666_s18 = sadd.s32 1, %s612_s15   ;;  %s96_s19 = sadd.s32 1, %s608_s14 }
   0x5   : > { %s93_s20 = ssub.s32 %s612_s15, %s666_s18  ;;  %p106_p0 = scmp.ne.s32.totalorder %s608_s14, %s604_s13 }
   0x6   : > { %p94_p1 = scmp.eq.s32.totalorder %s93_s20, 0  ;;  %p107_p2 = scmp.eq.s32.totalorder %s662_s16, 1 }
   0x7   : > { %p112_p3 = scmp.ne.s32.totalorder %s604_s13, %s600_s12  ;;  %p113_p4 = scmp.eq.s32.totalorder %s456_s17, 1 }
   0x8   : > { %s677_s21 = scalar_select %p94_p1, %s608_s14, %s96_s19  }
   0x9   : > { %p679_p5 = por %p107_p2, %p106_p0  ;;  %p683_p6 = por %p113_p4, %p112_p3 }
   0xa   : > { %p459_p7 = scmp.ge.s32.totalorder %s612_s15, 1  ;;  %p149_p8 = scmp.lt.s32.totalorder %s612_s15, 3 }
   0xc   : > { %p150_p9 = pnand %p459_p7, %p149_p8 }
   0xd   : > { %p177_p10 = scmp.lt.s32.totalorder (!%p150_p9), %s662_s16, 1  ;;  %v614_v0 = vmov (!%p150_p9), 0.0   ;;  %vm615_vm0 = vmmov (!%p150_p9), 0   ;;  %v616_v1 = vmov (!%p150_p9), 0   ;;  %v187_v2 = vld [vmem:[%s764_s1] sm:$0xff] (!%p150_p9)  ;;  %vm190_vm1 = vcmask (!%p150_p9), 64512  }
   0xe   : > { %153 = sbr.rel (%p150_p9) target bundleno = 1182 (0x49e), region = 32  ;;  %477 = vmatprep.subr.mxu0 (!%p150_p9), %v614_v0  ;;  %488 = vmatprep.subr.mxu1 (!%p150_p9), %v614_v0  ;;  %v188_v3 = vld [vmem:[%s764_s1 + $0x8] sm:$0xff] (!%p150_p9)  ;;  %v189_v6 = vld [vmem:[%s764_s1 + $0x10] sm:$0xff] (!%p150_p9)  ;;  %s617_s17 = smov (!%p150_p9), 1   ;;  %v280_v13 = vlaneseq (!%p150_p9)  ;;  %vm309_vm4 = vcmask (!%p150_p9), 7168  }
   0xf   : > { %479 = vmatprep.mubr.msk.f32.mxu0 (!%p150_p9), %vm615_vm0, %v614_v0  ;;  %482 = vmatprep.mubr.msk.f32.mxu1 (!%p150_p9), %vm615_vm0, %v614_v0  ;;  %s618_s19 = smov (!%p150_p9), 127   ;;  %s619_s30 = smov (!%p150_p9), 0.0  }
  0x10   : > { %542 = vset.pattern.permute.xlu0 (!%p150_p9), %v616_v1  ;;  %543 = vset.pattern.permute.xlu1 (!%p150_p9), %v616_v1  ;;  %v281_v15 = vand.u32 (!%p150_p9), 127, %v280_v13  ;;  %s174_s7 = sand.u32 (!%p150_p9), 1, %s604_s13  }
  0x11   : > { %s460_s8 = sshll.u32 (!%p150_p9), %s174_s7, 3 }
  0x12   : > { %vm282_vm2 = vcmp.eq.s32.totalorder (!%p150_p9), %v281_v15, 0  ;;  %vm288_vm3 = vcmp.eq.s32.totalorder (!%p150_p9), %v281_v15, 127  ;;  %s176_s10 = scalar_lea.vmem (!%p150_p9), [#allocation2], %s460_s8 }
  0x13   : > { %s385_s11 = sshll.u32 (!%p150_p9), %s176_s10, 4  ;;  %s723_s11 = int_to_ptr.vmem [resolvable:$true] %s385_s11 }
  0x15   : > { %s178_s24 = scalar_select %p177_p10, %s662_s16, 1 }
  0x17   : > { %s461_s25 = sshll.u32 %s178_s24, 3  ;;  %s490_s26 = smul.u32 24, %s178_s24 }
  0x18   : > { %s180_s29 = scalar_lea.vmem %s763_s0, %s461_s25 }
  0x19   : > { %v186_v4 = vld [vmem:[%s180_s29] sm:$0xff]  ;;  %s705_s9 = scalar_lea.vmem %s765_s2, %s490_s26 }
  0x1a   : > { %478 = vmatpush3.msra.mxu0 %v186_v4  ;;  %489 = vmatpush3.msra.mxu1 %v186_v4  ;;  %v294_v5 = vld [vmem:[%s705_s9] sm:$0xff]  ;;  %v466_v35 = vld [vmem:[%s705_s9 + $0x8] sm:$0xff]  ;;  %v467_v38 = vld [vmem:[%s705_s9 + $0x10] sm:$0xff]  ;;  %s470_s9 = sshll.u32 %s662_s16, 7  ;;  %s620_s16 = smov [#allocation2]  }
  0x1b   : > { %480 = vmatmul.mubr.msk.f32.vlgmr.msra.gmra.mrb[0].mxu0 %vm190_vm1, %v187_v2  ;;  %483 = vmatmul.mubr.msk.f32.vlgmr.msra.gmra.mrb[0].mxu1 %vm190_vm1, %v188_v3 }
  0x1c   : > { %485 = vmatprep.mubr.msk.f32.mxu1 %vm615_vm0, %v614_v0  ;;  %303 = vperm.xlu0 %542, %v294_v5  }
  0x1f   : > { %486 = vmatmul.mubr.msk.f32.gmra.mrb[2].mxu1 %vm190_vm1, %v189_v6 }
  0x9b   : > { %v304_v14 = vpop.permute.xlu0 %303 }
  0xee   : > { %v266_v7 = vpop.f32.mrb[0].mxu0  ;;  %v271_v8 = vpop.f32.mrb[0].mxu1 }
  0xef   : > { %v484_v9 = vpop.f32.mrb[1].mxu1  ;;  %283 = vrot.lane.b32.xlu0 %v266_v7, %s617_s17  ;;  %v481_v10 = vpop.f32.mrb[1].mxu0 }
  0xf2   : > { %v276_v11 = vpop.f32.mrb[2].mxu1 }
  0xf3   : > { %289 = vrot.lane.b32.xlu1 %v276_v11, %s618_s19  ;;  %v487_v12 = vpop.f32.mrb[3].mxu1 }
 0x161   : > { %v284_v16 = vpop.permute.xlu0 %283 }
 0x162   : > { %v287_v17 = vsel %vm282_vm2, 0.0, %v284_v16 }
 0x163   : > { %v299_v18 = vadd.f32 %v287_v17, %v271_v8 }
 0x165   : > { %v290_v19 = vpop.permute.xlu1 %289 }
 0x166   : > { %v293_v20 = vsel %vm288_vm3, 0.0, %v290_v19 }
 0x167   : > { %v300_v21 = vadd.f32 %v299_v18, %v293_v20 }
 0x169   : > { %v306_v22 = vadd.f32 %v304_v14, %v300_v21 }
 0x16b   : > { %307 = vadd.xlane.f32.xlu1 %v306_v22 }
 0x1f8   : > { %v308_v23 = vpop.xlane.xlu1 %307 }
 0x1f9   : > { %v310_v24 = vsel %vm309_vm4, %v308_v23, 0.0 }
 0x1fa   : > { %311 = vadd.xlane.f32.xlu0 %v310_v24 }
 0x287   : > { %v312_v25 = vpop.xlane.xlu0 %311 }
 0x288   : > { %v313_v26 = vrot.slane %v312_v25, 4 }
 0x28a   : > { %v314_v27 = vadd.f32 %v313_v26, %v312_v25 }
 0x28c   : > { %v315_v28 = vrot.slane %v314_v27, 2 }
 0x28e   : > { %v316_v29 = vadd.f32 %v315_v28, %v314_v27 }
 0x290   : > { %v317_v30 = vrot.slane %v316_v29, 1 }
 0x292   : > { %v318_v31 = vadd.f32 %v317_v30, %v316_v29 }
 0x294   : > { %491 = vpush %v318_v31 }
 0x2c5   : > { %s492_s20 = spop %491 }
 0x2c6   : > { %s322_s24 = smul.f32 0.0009765625, %s492_s20  ;;  %s721_s20 = scalar_lea.hbm %s766_s3, %s470_s9 }
 0x2c8   : > { %v323_v32 = vstv %s322_s24  ;;  %s338_s25 = smul.f32 %s322_s24, %s322_s24  ;;  %s372_s24 = scalar_lea.sflag [#allocation3], %s174_s7 }
 0x2c9   : > { %v324_v33 = vsub.f32 %v306_v22, %v323_v32 }
 0x2ca   : > { %s339_s26 = smul.f32 0.0, %s338_s25  ;;  %s550_s25 = scalar_lea.vmem %s723_s11, 128 }
 0x2cb   : > { %v325_v34 = vmul.f32 %v324_v33, %v324_v33  ;;  %p551_p11 = scmp.ne.s32.totalorder %s723_s11, %s550_s25 }
 0x2cd   : > { %326 = vadd.xlane.f32.xlu0 %v325_v34  ;;  %p552_p12 = pnand %p551_p11, %p679_p5 }
 0x2cf   : > { %p553_p13 = pneg %p552_p12 }
 0x2e3   : > { %353 = vperm.xlu0 %542, %v466_v35  }
 0x35a   : > { %v327_v36 = vpop.xlane.xlu0 %326 }
 0x35b   : > { %v328_v37 = vsel %vm309_vm4, %v327_v36, 0.0 }
 0x35c   : > { %329 = vadd.xlane.f32.xlu1 %v328_v37 }
 0x362   : > { %v354_v50 = vpop.permute.xlu0 %353 }
 0x36d   : > { %359 = vperm.xlu1 %543, %v467_v38  }
 0x3e9   : > { %v330_v39 = vpop.xlane.xlu1 %329 }
 0x3ea   : > { %v331_v40 = vrot.slane %v330_v39, 4 }
 0x3ec   : > { %v332_v41 = vadd.f32 %v331_v40, %v330_v39 }
 0x3ed   : > { %v360_v51 = vpop.permute.xlu1 %359 }
 0x3ee   : > { %v333_v42 = vrot.slane %v332_v41, 2 }
 0x3f0   : > { %v334_v43 = vadd.f32 %v333_v42, %v332_v41 }
 0x3f2   : > { %v335_v44 = vrot.slane %v334_v43, 1 }
 0x3f4   : > { %v336_v45 = vadd.f32 %v335_v44, %v334_v43 }
 0x3f6   : > { %493 = vpush %v336_v45 }
 0x427   : > { %s494_s27 = spop %493 }
 0x428   : > { %s340_s28 = ssub.f32 %s494_s27, %s339_s26  ;;  %s554_s26 = sshll.u32 %s620_s16, 4  ;;  %s555_s26 = int_to_ptr.vmem [resolvable:$false] %s554_s26 }
 0x429   : > { %s556_s27 = scalar_lea.vmem %s555_s26, 256  ;;  %p557_p0 = scmp.lt.s32.totalorder %s723_s11, %s555_s26 }
 0x42a   : > { %s343_s29 = smul.f32 0.0009765625, %s340_s28  ;;  %p558_p1 = scmp.lt.s32.totalorder %s556_s27, %s550_s25 }
 0x42c   : > { %s344_s4 = smax.f32 %s619_s30, %s343_s29  ;;  %p559_p2 = por %p558_p1, %p557_p0 }
 0x42d   : > { %s345_s5 = sadd.f32 1e-05, %s344_s4 }
 0x42e   : > { %p560_p3 = pnand %p559_p2, %p553_p13 }
 0x42f   : > { %v346_v46 = vstv %s345_s5 }
 0x430   : > { %544 = vrsqrt.f32 %v346_v46 }
 0x43a   : > { %v545_v47 = vpop.eup %544 }
 0x43b   : > { %495 = vpush %v545_v47 }
 0x46c   : > { %s496_s6 = spop %495 }
 0x46d   : > { %v349_v48 = vstv %s496_s6 }
 0x46e   : > { %v350_v49 = vmul.f32 %v349_v48, %v324_v33 }
 0x470   : > { %v356_v52 = vmul.f32 %v354_v50, %v350_v49 }
 0x472   : > { %v362_v53 = vadd.f32 %v360_v51, %v356_v52 }
 0x474   : > { %v468_v54 = vmul.f32 -1.442695, %v362_v53 }
 0x476   : > { %546 = vpow2.f32 %v468_v54 }
 0x480   : > { %v547_v55 = vpop.eup %546 }
 0x481   : > { %v366_v56 = vadd.f32 1.0, %v547_v55 }
 0x483   : > { %548 = vrcp.f32 %v366_v56 }
 0x48d   : > { %v549_v57 = vpop.eup %548 }
 0x48e   : > { %v369_v58 = vmul.f32 %v549_v57, %v362_v53 }
 0x490   : > { %370 = vst [vmem:[%s176_s10] sm:$0xff] %v369_v58 }
 0x491   : > { %563 = shalt.err (!%p560_p3)
}
 0x492   : > { %s564_s28 = scalar_lea.hbm %s721_s20, 128  ;;  %s568_s4 = scalar_lea.hbm %s766_s3, 256 }
 0x493   : > { %p565_p4 = scmp.ne.s32.totalorder %s721_s20, %s564_s28  ;;  %p569_p9 = scmp.lt.u32.totalorder %s721_s20, %s766_s3 }
 0x494   : > { %p570_p10 = scmp.lt.u32.totalorder %s568_s4, %s564_s28  ;;  %p572_p12 = scmp.lt.u32.totalorder %s564_s28, %s721_s20 }
 0x495   : > { %p566_p7 = pnand %p565_p4, %p679_p5 }
 0x496   : > { %p571_p11 = por %p570_p10, %p569_p9 }
 0x497   : > { %p567_p8 = pneg %p566_p7 }
 0x498   : > { %p573_p13 = por %p572_p12, %p571_p11 }
 0x49a   : > { %p574_p0 = pnand %p573_p13, %p567_p8 }
 0x49c   : > { %577 = shalt.err (!%p574_p0)
}
 0x49d   : > { %497 = dma.vmem_to_hbm [thread:$0]  (%p679_p5), %s723_s11, 128, %s721_s20, %s372_s24  }
 0x49e PF: > { %p503_p1 = scmp.ge.s32.totalorder %s612_s15, 2  ;;  %s397_s7 = sand.u32 1, %s600_s12  }
 0x49f   : > { %s398_s8 = scalar_lea.sflag [#allocation3], %s397_s7 }
 0x4a0   : > { %p500_p2 = pnand %p503_p1, %p683_p6 }
 0x4a2   : > { %595 = dma.done.wait (!%p500_p2), %s398_s8, 128  }
 0x4a3   : > { %597 = vsyncadd (!%p500_p2), %s398_s8, 4294967168  ;;  %p13_p3 = scmp.ge.s32.totalorder %s666_s18, 4   ;;  %s769_s12 = smov %s604_s13 }
 0x4a4   : > { %s770_s13 = smov %s608_s14  ;;  %s771_s14 = smov %s677_s21 }
 0x4a5   : > { %s772_s15 = smov %s666_s18  ;;  %15 = sbr.rel (!%p13_p3) target bundleno = 3 (0x3), region = 72 }
 0x4ac   :  { %403 = vsyncpa [#allocation3], 1 }
 0x4ad   :  { %405 = vsyncpa [#allocation3 + $0x1], 1 }

</bundles_post_ra>
